<compile_context>
chip_gen: v6e
topology: v6e:2x2x1
jax: 0.10.0
libtpu: 0.0.40
codegen_flags: <defaults>
</compile_context>

<pallas_src>
import functools

import jax
import jax.numpy as jnp
from jax.experimental import pallas as pl
from jax.experimental.pallas import tpu as pltpu


_HALO = 2          # 5x5 conv, padding 2
_KH = _KW = 5
_C = 3             # the module's conv is hard-wired to 3 channels


# ----------------------------------------------------------------------------
# Pallas kernel: masked affine transform + Conv2d(3,3,(5,5),pad=2,bias=False)
# ----------------------------------------------------------------------------
def _color_aug_kernel(scale_ref, shift_ref, band_ref, x_ref, o_ref, ypack_ref):
    """One grid step processes Bt samples.

    scale_ref, shift_ref : (Bpad,) f32 in SMEM - per-sample affine scalars.
    band_ref : (5, N, N) f32 VMEM (N = round_up(3*H, 8)) - banded conv weights,
               one matrix per horizontal tap kw; vertical zero padding is
               already folded in (out-of-image taps are simply absent).
    x_ref    : (Bt, C, H, W) f32 VMEM block (natural layout, auto-pipelined).
    o_ref    : (Bt, C, H, W) f32 VMEM block.
    ypack_ref: (N, L) f32 VMEM scratch - transformed images packed channel-
               stacked on sublanes and sample-packed along lanes at stride
               P = W + 4 (the 4 zero gap lanes provide the horizontal conv
               padding for the lane rolls).
    """
    Bt, C, H, W = x_ref.shape
    L = ypack_ref.shape[-1]
    P = W + 2 * _HALO
    base = pl.program_id(0) * Bt

    # Zero fill supplies the horizontal conv padding (gap + tail lanes) and the
    # unused padded rows.  Re-done every step so it also holds on both cores
    # when the "parallel" grid axis is sharded across TensorCores.
    ypack_ref[...] = jnp.zeros_like(ypack_ref)

    # ---- per-sample transform mask + affine transform, then lane-pack.
    # Exact PyTorch semantics:
    #   keep(h, w) = (row h has a pixel with channel-sum != 0)
    #              & (col w has a pixel with channel-sum != 0)
    #   y = (scale * x + shift) * keep     (masked-out pixels feed 0 to conv)
    for b in range(Bt):
        s = scale_ref[base + b]
        t = shift_ref[base + b]
        xb = x_ref[b]                                         # (C, H, W)
        nz = ((xb[0] + xb[1] + xb[2]) != 0.0).astype(jnp.float32)
        row_any = jnp.max(nz, axis=1, keepdims=True) > 0.5    # (H, 1)
        col_any = jnp.max(nz, axis=0, keepdims=True) > 0.5    # (1, W)
        keep = jnp.logical_and(row_any, col_any)              # (H, W)
        col0 = b * P
        for ci in range(C):
            y = jnp.where(keep, s * xb[ci] + t, 0.0)
            ypack_ref[ci * H: ci * H + H, col0: col0 + W] = y

    # ---- 5x5 conv as 5 banded MXU matmuls (one per horizontal tap kw).
    # roll wrap-around is safe: every sample slot ends with >= 2*HALO zero gap
    # lanes, so lanes read across slot / array boundaries are always zero.
    ystack = ypack_ref[...]                                    # (N, L)
    acc = jnp.zeros((band_ref.shape[1], L), jnp.float32)
    for kw in range(_KW):
        if kw == _HALO:
            ykw = ystack
        else:
            ykw = pltpu.roll(ystack, shift=(_HALO - kw) % L, axis=1)
        acc = acc + jnp.dot(band_ref[kw], ykw,
                            preferred_element_type=jnp.float32)

    # ---- unpack lanes back to the natural (Bt, C, H, W) output block.
    for b in range(Bt):
        col0 = b * P
        for ci in range(C):
            o_ref[b, ci] = acc[ci * H:(ci + 1) * H, col0: col0 + W]


def _round_up(n, m):
    return (n + m - 1) // m * m


def _band_matrices(conv_w, H):
    """(5, 3H, 3H) banded weight matrices, one per horizontal tap kw.

    band[kw, co*H + h, ci*H + p] = conv_w[co, ci, p - h + 2, kw]   (if valid)
    Out-of-image vertical taps are simply dropped, which realizes the conv's
    zero padding along H without storing halo rows.
    """
    eyes = jnp.stack([jnp.eye(H, H, k=kh - _HALO, dtype=jnp.float32)
                      for kh in range(_KH)])                       # (5, H, H)
    band = jnp.einsum('oikw,khp->wohip', conv_w.astype(jnp.float32), eyes)
    return band.reshape(_KW, _C * H, _C * H)


def _transform_and_conv(x, scale, shift, conv_w):
    """Masked per-sample affine transform + 3->3 5x5 conv (bias-free)."""
    B, C, H, W = x.shape
    assert C == _C, "ColorAugmentation's conv is hard-wired to 3 channels"

    G = 2 * _HALO                    # zero gap between lane-packed samples
    assert G >= 2 * _HALO            # required for roll-based horizontal pad
    P = W + G
    N = _round_up(_C * H, 8)         # padded row count of the packed stack

    # Generation-aware sizing (v5e/v6e: 128 MiB VMEM, v7x: 64 MiB).
    try:
        vmem_phys = pltpu.get_tpu_info().vmem_capacity_bytes
    except Exception:
        vmem_phys = 64 << 20
    big_vmem = vmem_phys >= (96 << 20)
    vmem_limit = (64 << 20) if big_vmem else (32 << 20)
    lane_target = 1024 if big_vmem else 512
    budget = vmem_limit - (8 << 20)

    def _vmem_bytes(bt):
        l = _round_up(bt * P, 128)
        blk = bt * C * _round_up(H, 8) * _round_up(W, 128) * 4    # tiled block
        band_b = _KW * N * _round_up(N, 128) * 4                  # resident weights
        packed = N * l * 4                                        # scratch row
        # x & o double-buffered blocks + band + scratch + acc + roll temps
        return 2 * 2 * blk + 2 * band_b + 4 * packed

    Bt = max(1, min(B, lane_target // P, 32))
    while Bt > 1 and _vmem_bytes(Bt) > budget:
        Bt -= 1
    if Bt >= B and B >= 2:
        # Keep >= 2 grid steps so v7x's second TensorCore (and the block
        # pipeline) always has work; costs at most one extra ~0.35us step.
        Bt = (B + 1) // 2
    # TODO(synk): strip-tile H (2-row halo) as a second parallel grid axis for
    # very large images so per-step blocks stay within v7x's 64 MiB VMEM.

    nb = -(-B // Bt)
    Bpad = nb * Bt
    L = _round_up(Bt * P, 128)       # lane width multiple of 128

    if Bpad != B:   # contiguous batch pad only (no transposes); usually a no-op
        pad = Bpad - B
        x = jnp.pad(x, ((0, pad), (0, 0), (0, 0), (0, 0)))
        scale = jnp.pad(scale, (0, pad))
        shift = jnp.pad(shift, (0, pad))

    band = _band_matrices(conv_w, H)
    band = jnp.pad(band, ((0, 0), (0, N - _C * H), (0, N - _C * H)))

    out = pl.pallas_call(
        _color_aug_kernel,
        out_shape=jax.ShapeDtypeStruct((Bpad, C, H, W), jnp.float32),
        grid=(nb,),
        in_specs=[
            pl.BlockSpec(memory_space=pltpu.MemorySpace.SMEM),        # scale (Bpad,)
            pl.BlockSpec(memory_space=pltpu.MemorySpace.SMEM),        # shift (Bpad,)
            pl.BlockSpec((_KW, N, N), lambda i: (0, 0, 0)),           # band (resident)
            pl.BlockSpec((Bt, C, H, W), lambda i: (i, 0, 0, 0)),      # x
        ],
        out_specs=pl.BlockSpec((Bt, C, H, W), lambda i: (i, 0, 0, 0)),
        scratch_shapes=[pltpu.VMEM((N, L), jnp.float32)],
        compiler_params=pltpu.CompilerParams(
            dimension_semantics=("parallel",),
            vmem_limit_bytes=vmem_limit,
        ),
    )(scale, shift, band, x)

    return out[:B] if Bpad != B else out


# ----------------------------------------------------------------------------
# Deterministic parameter construction (mirrors ColorAugmentation.__init__)
# ----------------------------------------------------------------------------
def init_params(key):
    k_f, k_n, k_c, k_conv = jax.random.split(key, 4)
    n_hidden = 1 + 10
    lin_bound = 1.0 / jnp.sqrt(float(n_hidden))
    conv_bound = 1.0 / jnp.sqrt(3.0 * 5.0 * 5.0)
    return {
        "feature": jax.random.normal(k_f, (10,), jnp.float32),           # randn(10)
        "n_w": jax.random.uniform(k_n, (2, n_hidden), jnp.float32,
                                  minval=-lin_bound, maxval=lin_bound),   # Linear(11,2)
        "c_w": jax.random.uniform(k_c, (2, n_hidden), jnp.float32,
                                  minval=-lin_bound, maxval=lin_bound),   # Linear(11,2)
        "scale": jnp.array([1.0], jnp.float32),
        "logits": jnp.zeros((1,), jnp.float32),
        "conv_w": jax.random.uniform(k_conv, (3, 3, 5, 5), jnp.float32,
                                     minval=-conv_bound, maxval=conv_bound),
    }


# ----------------------------------------------------------------------------
# Per-sample (scale, shift) glue - tiny regressions + relaxed Bernoulli.
# ----------------------------------------------------------------------------
def _per_sample_affine(params, B, magnitude, key, re):
    k_noise, k_u = jax.random.split(key)
    noise = params["feature"] + jax.random.normal(k_noise, (10,), jnp.float32) / 100.0
    mag = jnp.full((B, 1), magnitude, jnp.float32)
    noise = jnp.concatenate(
        [jnp.broadcast_to(noise[None, :], (B, 10)), mag], axis=1)

    gfactor = noise @ params["n_w"].T        # (B, 2)
    factor = noise @ params["c_w"].T         # (B, 2)
    scale = jax.nn.sigmoid(gfactor[:, 0] + factor[:, 0])
    shift = jax.nn.sigmoid(gfactor[:, 1] + factor[:, 1])
    scale = params["scale"][0] * (scale - 0.5) + 1.0
    shift = shift - 0.5

    if re:
        # sampling(): stochastic relaxed bernoulli (relax=True, stochastic=True)
        logits = jnp.broadcast_to(params["logits"], (B,))
        u = jax.random.uniform(k_u, (B,), jnp.float32,
                               minval=1e-6, maxval=1.0 - 1e-6)
        l = jnp.log(u) - jnp.log(1.0 - u)
        prob = jax.nn.sigmoid((l + logits) / 0.05)
        scale = 1.0 - prob + prob * scale
        shift = prob * shift
    return scale.astype(jnp.float32), shift.astype(jnp.float32)


@functools.partial(jax.jit, static_argnames=("re",))
def color_augmentation_forward(params, x, magnitude, key, re=True):
    scale, shift = _per_sample_affine(params, x.shape[0], magnitude, key, re)
    return _transform_and_conv(x.astype(jnp.float32), scale, shift,
                               params["conv_w"].astype(jnp.float32))


@functools.partial(jax.jit, static_argnames=("re",))
def color_augmentation_reference(params, x, magnitude, key, re=True):
    """Pure-JAX reference of the PyTorch module (for a runtime sanity check)."""
    x = x.astype(jnp.float32)
    B, C, H, W = x.shape
    scale, shift = _per_sample_affine(params, B, magnitude, key, re)
    zero = (jnp.sum(x, axis=1, keepdims=True) == 0.0).astype(jnp.float32)
    row_ok = jnp.sum(zero, axis=-1, keepdims=True) < W
    col_ok = jnp.sum(zero, axis=-2, keepdims=True) < H
    keep = jnp.logical_and(row_ok, col_ok).astype(jnp.float32)
    y = (scale[:, None, None, None] * x + shift[:, None, None, None]) * keep
    return jax.lax.conv_general_dilated(
        y, params["conv_w"].astype(jnp.float32), window_strides=(1, 1),
        padding=((2, 2), (2, 2)), dimension_numbers=("NCHW", "OIHW", "NCHW"),
        precision=jax.lax.Precision.HIGHEST)


if __name__ == "__main__":
    key = jax.random.PRNGKey(0)
    k_param, k_x, k_fwd = jax.random.split(key, 3)

    params = init_params(k_param)

    B, C, H, W = 2, 3, 16, 16
    x = jax.random.normal(k_x, (B, C, H, W), jnp.float32)
    # Put an all-zero row / column in one sample so the mask path is exercised.
    x = x.at[1, :, 3, :].set(0.0)
    x = x.at[1, :, :, 5].set(0.0)

    out = color_augmentation_forward(params, x, 0.5, k_fwd, re=True)
    out = jax.block_until_ready(out)

    ref = jax.block_until_ready(
        color_augmentation_reference(params, x, 0.5, k_fwd, re=True))
    err = float(jnp.max(jnp.abs(out - ref)))

    assert out.shape == (B, C, H, W) and out.dtype == jnp.float32
    assert bool(jnp.all(jnp.isfinite(out)))
    assert err < 5e-2, f"max abs error vs reference: {err}"
    print("KERNEL_OK")
</pallas_src>

<mosaic_0001>
module attributes {stable_mosaic.version = 11 : i64} {
  func.func @_color_aug_kernel(%arg0: i32, %arg1: memref<2xf32, #tpu.memory_space<smem>>, %arg2: memref<2xf32, #tpu.memory_space<smem>>, %arg3: memref<5x48x48xf32, #tpu.memory_space<vmem>>, %arg4: memref<1x3x16x16xf32, #tpu.memory_space<vmem>>, %arg5: memref<1x3x16x16xf32, #tpu.memory_space<vmem>>, %arg6: memref<48x128xf32, #tpu.memory_space<vmem>>) attributes {dimension_semantics = [#tpu.dimension_semantics<parallel>], iteration_bounds = array<i64: 2>, scalar_prefetch = 0 : i64, scratch_operands = 1 : i64, tpu.core_type = #tpu.core_type<tc>, window_params = [{transform_indices = @transform_0, window_bounds = array<i64: 2>}, {transform_indices = @transform_1, window_bounds = array<i64: 2>}, {pipeline_mode = #tpu.pipeline_mode<synchronous>, transform_indices = @transform_2, window_bounds = array<i64: 5, 48, 48>}, {transform_indices = @transform_3, window_bounds = array<i64: 1, 3, 16, 16>}, {transform_indices = @transform_4, window_bounds = array<i64: 1, 3, 16, 16>}]} {
    %c1_i32 = arith.constant 1 : i32
    %0 = arith.muli %arg0, %c1_i32 : i32
    %cst = arith.constant 0.000000e+00 : f32
    %1 = vector.broadcast %cst : f32 to vector<48x128xf32>
    %c0 = arith.constant 0 : index
    %c0_0 = arith.constant 0 : index
    %2 = vector.load %arg6[%c0, %c0_0] : memref<48x128xf32, #tpu.memory_space<vmem>>, vector<48x128xf32>
    tpu.vector_store %arg6[%c0, %c0_0], %1 {strides = array<i32>} : memref<48x128xf32, #tpu.memory_space<vmem>>, vector<48x128xf32>,
    %c0_i32 = arith.constant 0 : i32
    %3 = arith.addi %0, %c0_i32 : i32
    %4 = arith.index_cast %3 : i32 to index
    %5 = memref.load %arg1[%4] : memref<2xf32, #tpu.memory_space<smem>>
    %c0_i32_1 = arith.constant 0 : i32
    %6 = arith.addi %0, %c0_i32_1 : i32
    %7 = arith.index_cast %6 : i32 to index
    %8 = memref.load %arg2[%7] : memref<2xf32, #tpu.memory_space<smem>>
    %c0_2 = arith.constant 0 : index
    %c0_3 = arith.constant 0 : index
    %c0_4 = arith.constant 0 : index
    %c0_5 = arith.constant 0 : index
    %9 = vector.load %arg4[%c0_2, %c0_3, %c0_4, %c0_5] : memref<1x3x16x16xf32, #tpu.memory_space<vmem>>, vector<1x3x16x16xf32>
    %10 = vector.shape_cast %9 : vector<1x3x16x16xf32> to vector<3x16x16xf32>
    %11 = vector.extract_strided_slice %10 {offsets = [0, 0, 0], sizes = [1, 16, 16], strides = [1, 1, 1]} : vector<3x16x16xf32> to vector<1x16x16xf32>
    %12 = vector.shape_cast %11 : vector<1x16x16xf32> to vector<16x16xf32>
    %13 = vector.extract_strided_slice %10 {offsets = [1, 0, 0], sizes = [1, 16, 16], strides = [1, 1, 1]} : vector<3x16x16xf32> to vector<1x16x16xf32>
    %14 = vector.shape_cast %13 : vector<1x16x16xf32> to vector<16x16xf32>
    %15 = arith.addf %12, %14 : vector<16x16xf32>
    %16 = vector.extract_strided_slice %10 {offsets = [2, 0, 0], sizes = [1, 16, 16], strides = [1, 1, 1]} : vector<3x16x16xf32> to vector<1x16x16xf32>
    %17 = vector.shape_cast %16 : vector<1x16x16xf32> to vector<16x16xf32>
    %18 = arith.addf %15, %17 : vector<16x16xf32>
    %cst_6 = arith.constant 0.000000e+00 : f32
    %19 = vector.broadcast %cst_6 : f32 to vector<16x16xf32>
    %20 = arith.cmpf one, %18, %19 : vector<16x16xf32>
    %21 = arith.extui %20 : vector<16x16xi1> to vector<16x16xi32>
    %22 = arith.sitofp %21 : vector<16x16xi32> to vector<16x16xf32>
    %cst_7 = arith.constant dense<0xFF800000> : vector<16xf32>
    %23 = vector.multi_reduction <maximumf>, %22, %cst_7 [1] : vector<16x16xf32> to vector<16xf32>
    %24 = vector.shape_cast %23 : vector<16xf32> to vector<16x1xf32>
    %cst_8 = arith.constant 5.000000e-01 : f32
    %25 = vector.broadcast %cst_8 : f32 to vector<16x1xf32>
    %26 = arith.cmpf ogt, %24, %25 : vector<16x1xf32>
    %cst_9 = arith.constant dense<0xFF800000> : vector<16xf32>
    %27 = vector.multi_reduction <maximumf>, %22, %cst_9 [0] : vector<16x16xf32> to vector<16xf32>
    %28 = vector.shape_cast %27 : vector<16xf32> to vector<1x16xf32>
    %cst_10 = arith.constant 5.000000e-01 : f32
    %29 = vector.broadcast %cst_10 : f32 to vector<1x16xf32>
    %30 = arith.cmpf ogt, %28, %29 : vector<1x16xf32>
    %31 = vector.broadcast %26 : vector<16x1xi1> to vector<16x16xi1>
    %32 = vector.broadcast %30 : vector<1x16xi1> to vector<16x16xi1>
    %33 = arith.andi %31, %32 : vector<16x16xi1>
    %34 = vector.extract_strided_slice %10 {offsets = [0, 0, 0], sizes = [1, 16, 16], strides = [1, 1, 1]} : vector<3x16x16xf32> to vector<1x16x16xf32>
    %35 = vector.shape_cast %34 : vector<1x16x16xf32> to vector<16x16xf32>
    %36 = vector.broadcast %5 : f32 to vector<16x16xf32>
    %37 = arith.mulf %36, %35 : vector<16x16xf32>
    %38 = vector.broadcast %8 : f32 to vector<16x16xf32>
    %39 = arith.addf %37, %38 : vector<16x16xf32>
    %cst_11 = arith.constant 0.000000e+00 : f32
    %40 = vector.broadcast %cst_11 : f32 to vector<16x16xf32>
    %41 = arith.select %33, %39, %40 : vector<16x16xi1>, vector<16x16xf32>
    %c0_12 = arith.constant 0 : index
    %c0_13 = arith.constant 0 : index
    %42 = vector.load %arg6[%c0_12, %c0_13] : memref<48x128xf32, #tpu.memory_space<vmem>>, vector<16x16xf32>
    tpu.vector_store %arg6[%c0_12, %c0_13], %41 {strides = array<i32>} : memref<48x128xf32, #tpu.memory_space<vmem>>, vector<16x16xf32>,
    %43 = vector.extract_strided_slice %10 {offsets = [1, 0, 0], sizes = [1, 16, 16], strides = [1, 1, 1]} : vector<3x16x16xf32> to vector<1x16x16xf32>
    %44 = vector.shape_cast %43 : vector<1x16x16xf32> to vector<16x16xf32>
    %45 = vector.broadcast %5 : f32 to vector<16x16xf32>
    %46 = arith.mulf %45, %44 : vector<16x16xf32>
    %47 = vector.broadcast %8 : f32 to vector<16x16xf32>
    %48 = arith.addf %46, %47 : vector<16x16xf32>
    %cst_14 = arith.constant 0.000000e+00 : f32
    %49 = vector.broadcast %cst_14 : f32 to vector<16x16xf32>
    %50 = arith.select %33, %48, %49 : vector<16x16xi1>, vector<16x16xf32>
    %c16 = arith.constant 16 : index
    %c0_15 = arith.constant 0 : index
    %51 = vector.load %arg6[%c16, %c0_15] : memref<48x128xf32, #tpu.memory_space<vmem>>, vector<16x16xf32>
    tpu.vector_store %arg6[%c16, %c0_15], %50 {strides = array<i32>} : memref<48x128xf32, #tpu.memory_space<vmem>>, vector<16x16xf32>,
    %52 = vector.extract_strided_slice %10 {offsets = [2, 0, 0], sizes = [1, 16, 16], strides = [1, 1, 1]} : vector<3x16x16xf32> to vector<1x16x16xf32>
    %53 = vector.shape_cast %52 : vector<1x16x16xf32> to vector<16x16xf32>
    %54 = vector.broadcast %5 : f32 to vector<16x16xf32>
    %55 = arith.mulf %54, %53 : vector<16x16xf32>
    %56 = vector.broadcast %8 : f32 to vector<16x16xf32>
    %57 = arith.addf %55, %56 : vector<16x16xf32>
    %cst_16 = arith.constant 0.000000e+00 : f32
    %58 = vector.broadcast %cst_16 : f32 to vector<16x16xf32>
    %59 = arith.select %33, %57, %58 : vector<16x16xi1>, vector<16x16xf32>
    %c32 = arith.constant 32 : index
    %c0_17 = arith.constant 0 : index
    %60 = vector.load %arg6[%c32, %c0_17] : memref<48x128xf32, #tpu.memory_space<vmem>>, vector<16x16xf32>
    tpu.vector_store %arg6[%c32, %c0_17], %59 {strides = array<i32>} : memref<48x128xf32, #tpu.memory_space<vmem>>, vector<16x16xf32>,
    %c0_18 = arith.constant 0 : index
    %c0_19 = arith.constant 0 : index
    %61 = vector.load %arg6[%c0_18, %c0_19] : memref<48x128xf32, #tpu.memory_space<vmem>>, vector<48x128xf32>
    %cst_20 = arith.constant 0.000000e+00 : f32
    %62 = vector.broadcast %cst_20 : f32 to vector<48x128xf32>
    %c2_i32 = arith.constant 2 : i32
    %63 = tpu.dynamic_rotate %61 by %c2_i32 dim 1 : vector<48x128xf32>, i32 -> vector<48x128xf32>
    %c0_21 = arith.constant 0 : index
    %c0_22 = arith.constant 0 : index
    %c0_23 = arith.constant 0 : index
    %64 = vector.load %arg3[%c0_21, %c0_22, %c0_23] : memref<5x48x48xf32, #tpu.memory_space<vmem>>, vector<1x48x48xf32>
    %65 = vector.shape_cast %64 : vector<1x48x48xf32> to vector<48x48xf32>
    %cst_24 = arith.constant dense<0.000000e+00> : vector<48x128xf32>
    %66 = tpu.matmul %65, %63, %cst_24 {dimension_numbers = #tpu.dot_dimension_numbers<[1], [0], [0], [1], [0, 0, 1, 1], [], []>} : vector<48x48xf32>, vector<48x128xf32>, vector<48x128xf32> -> vector<48x128xf32>
    %67 = arith.addf %62, %66 : vector<48x128xf32>
    %c1_i32_25 = arith.constant 1 : i32
    %68 = tpu.dynamic_rotate %61 by %c1_i32_25 dim 1 : vector<48x128xf32>, i32 -> vector<48x128xf32>
    %c1 = arith.constant 1 : index
    %c0_26 = arith.constant 0 : index
    %c0_27 = arith.constant 0 : index
    %69 = vector.load %arg3[%c1, %c0_26, %c0_27] : memref<5x48x48xf32, #tpu.memory_space<vmem>>, vector<1x48x48xf32>
    %70 = vector.shape_cast %69 : vector<1x48x48xf32> to vector<48x48xf32>
    %cst_28 = arith.constant dense<0.000000e+00> : vector<48x128xf32>
    %71 = tpu.matmul %70, %68, %cst_28 {dimension_numbers = #tpu.dot_dimension_numbers<[1], [0], [0], [1], [0, 0, 1, 1], [], []>} : vector<48x48xf32>, vector<48x128xf32>, vector<48x128xf32> -> vector<48x128xf32>
    %72 = arith.addf %67, %71 : vector<48x128xf32>
    %c2 = arith.constant 2 : index
    %c0_29 = arith.constant 0 : index
    %c0_30 = arith.constant 0 : index
    %73 = vector.load %arg3[%c2, %c0_29, %c0_30] : memref<5x48x48xf32, #tpu.memory_space<vmem>>, vector<1x48x48xf32>
    %74 = vector.shape_cast %73 : vector<1x48x48xf32> to vector<48x48xf32>
    %cst_31 = arith.constant dense<0.000000e+00> : vector<48x128xf32>
    %75 = tpu.matmul %74, %61, %cst_31 {dimension_numbers = #tpu.dot_dimension_numbers<[1], [0], [0], [1], [0, 0, 1, 1], [], []>} : vector<48x48xf32>, vector<48x128xf32>, vector<48x128xf32> -> vector<48x128xf32>
    %76 = arith.addf %72, %75 : vector<48x128xf32>
    %c127_i32 = arith.constant 127 : i32
    %77 = tpu.dynamic_rotate %61 by %c127_i32 dim 1 : vector<48x128xf32>, i32 -> vector<48x128xf32>
    %c3 = arith.constant 3 : index
    %c0_32 = arith.constant 0 : index
    %c0_33 = arith.constant 0 : index
    %78 = vector.load %arg3[%c3, %c0_32, %c0_33] : memref<5x48x48xf32, #tpu.memory_space<vmem>>, vector<1x48x48xf32>
    %79 = vector.shape_cast %78 : vector<1x48x48xf32> to vector<48x48xf32>
    %cst_34 = arith.constant dense<0.000000e+00> : vector<48x128xf32>
    %80 = tpu.matmul %79, %77, %cst_34 {dimension_numbers = #tpu.dot_dimension_numbers<[1], [0], [0], [1], [0, 0, 1, 1], [], []>} : vector<48x48xf32>, vector<48x128xf32>, vector<48x128xf32> -> vector<48x128xf32>
    %81 = arith.addf %76, %80 : vector<48x128xf32>
    %c126_i32 = arith.constant 126 : i32
    %82 = tpu.dynamic_rotate %61 by %c126_i32 dim 1 : vector<48x128xf32>, i32 -> vector<48x128xf32>
    %c4 = arith.constant 4 : index
    %c0_35 = arith.constant 0 : index
    %c0_36 = arith.constant 0 : index
    %83 = vector.load %arg3[%c4, %c0_35, %c0_36] : memref<5x48x48xf32, #tpu.memory_space<vmem>>, vector<1x48x48xf32>
    %84 = vector.shape_cast %83 : vector<1x48x48xf32> to vector<48x48xf32>
    %cst_37 = arith.constant dense<0.000000e+00> : vector<48x128xf32>
    %85 = tpu.matmul %84, %82, %cst_37 {dimension_numbers = #tpu.dot_dimension_numbers<[1], [0], [0], [1], [0, 0, 1, 1], [], []>} : vector<48x48xf32>, vector<48x128xf32>, vector<48x128xf32> -> vector<48x128xf32>
    %86 = arith.addf %81, %85 : vector<48x128xf32>
    %87 = vector.extract_strided_slice %86 {offsets = [0, 0], sizes = [16, 16], strides = [1, 1]} : vector<48x128xf32> to vector<16x16xf32>
    %c0_38 = arith.constant 0 : index
    %c0_39 = arith.constant 0 : index
    %c0_40 = arith.constant 0 : index
    %c0_41 = arith.constant 0 : index
    %88 = vector.load %arg5[%c0_38, %c0_39, %c0_40, %c0_41] : memref<1x3x16x16xf32, #tpu.memory_space<vmem>>, vector<1x1x16x16xf32>
    %89 = vector.shape_cast %88 : vector<1x1x16x16xf32> to vector<16x16xf32>
    %90 = vector.shape_cast %87 : vector<16x16xf32> to vector<1x1x16x16xf32>
    tpu.vector_store %arg5[%c0_38, %c0_39, %c0_40, %c0_41], %90 {strides = array<i32>} : memref<1x3x16x16xf32, #tpu.memory_space<vmem>>, vector<1x1x16x16xf32>,
    %91 = vector.extract_strided_slice %86 {offsets = [16, 0], sizes = [16, 16], strides = [1, 1]} : vector<48x128xf32> to vector<16x16xf32>
    %c0_42 = arith.constant 0 : index
    %c1_43 = arith.constant 1 : index
    %c0_44 = arith.constant 0 : index
    %c0_45 = arith.constant 0 : index
    %92 = vector.load %arg5[%c0_42, %c1_43, %c0_44, %c0_45] : memref<1x3x16x16xf32, #tpu.memory_space<vmem>>, vector<1x1x16x16xf32>
    %93 = vector.shape_cast %92 : vector<1x1x16x16xf32> to vector<16x16xf32>
    %94 = vector.shape_cast %91 : vector<16x16xf32> to vector<1x1x16x16xf32>
    tpu.vector_store %arg5[%c0_42, %c1_43, %c0_44, %c0_45], %94 {strides = array<i32>} : memref<1x3x16x16xf32, #tpu.memory_space<vmem>>, vector<1x1x16x16xf32>,
    %95 = vector.extract_strided_slice %86 {offsets = [32, 0], sizes = [16, 16], strides = [1, 1]} : vector<48x128xf32> to vector<16x16xf32>
    %c0_46 = arith.constant 0 : index
    %c2_47 = arith.constant 2 : index
    %c0_48 = arith.constant 0 : index
    %c0_49 = arith.constant 0 : index
    %96 = vector.load %arg5[%c0_46, %c2_47, %c0_48, %c0_49] : memref<1x3x16x16xf32, #tpu.memory_space<vmem>>, vector<1x1x16x16xf32>
    %97 = vector.shape_cast %96 : vector<1x1x16x16xf32> to vector<16x16xf32>
    %98 = vector.shape_cast %95 : vector<16x16xf32> to vector<1x1x16x16xf32>
    tpu.vector_store %arg5[%c0_46, %c2_47, %c0_48, %c0_49], %98 {strides = array<i32>} : memref<1x3x16x16xf32, #tpu.memory_space<vmem>>, vector<1x1x16x16xf32>,
    return
  }
  func.func @transform_0(%arg0: i32) -> i32 {
    %c0_i32 = arith.constant 0 : i32
    %c0_i32_0 = arith.constant 0 : i32
    return %c0_i32 : i32
  }
  func.func @transform_1(%arg0: i32) -> i32 {
    %c0_i32 = arith.constant 0 : i32
    %c0_i32_0 = arith.constant 0 : i32
    return %c0_i32 : i32
  }
  func.func @transform_2(%arg0: i32) -> (i32, i32, i32) {
    %c0_i32 = arith.constant 0 : i32
    %c0_i32_0 = arith.constant 0 : i32
    %c0_i32_1 = arith.constant 0 : i32
    %c0_i32_2 = arith.constant 0 : i32
    return %c0_i32, %c0_i32_0, %c0_i32_1 : i32, i32, i32
  }
  func.func @transform_3(%arg0: i32) -> (i32, i32, i32, i32) {
    %c0_i32 = arith.constant 0 : i32
    %c0_i32_0 = arith.constant 0 : i32
    %c0_i32_1 = arith.constant 0 : i32
    %c0_i32_2 = arith.constant 0 : i32
    return %arg0, %c0_i32, %c0_i32_0, %c0_i32_1 : i32, i32, i32, i32
  }
  func.func @transform_4(%arg0: i32) -> (i32, i32, i32, i32) {
    %c0_i32 = arith.constant 0 : i32
    %c0_i32_0 = arith.constant 0 : i32
    %c0_i32_1 = arith.constant 0 : i32
    %c0_i32_2 = arith.constant 0 : i32
    return %arg0, %c0_i32, %c0_i32_0, %c0_i32_1 : i32, i32, i32, i32
  }
}

</mosaic_0001>

<bundles_post_ra>
// kernel: color_augmentation_forward.1
= control target key start
LH: loop header
LB: loop body
LE: loop exit
PB: predicated region body
PF: predicated region fallthrough
CT: control target
= control target key end

     0   :  { %9 = vsyncpa [#allocation5], 0  ;;  %s1857_s0 = inlined_call_operand.vmem [shape: f32[2], index: 0, kind: input, shape index: {}]   ;;  %s1858_s1 = inlined_call_operand.vmem [shape: f32[2], index: 1, kind: input, shape index: {}]   ;;  %s1859_s2 = inlined_call_operand.vmem [shape: f32[5,48,48], index: 2, kind: input, shape index: {}]   ;;  %s1860_s3 = inlined_call_operand.vmem [shape: f32[2,3,16,16], index: 3, kind: input, shape index: {}]   ;;  %s1861_s4 = inlined_call_operand.hbm [shape: f32[2,3,16,16], index: 4, kind: output, shape index: {}]  }
   0x1   :  { %10 = vsyncpa [#allocation7], 0 }
   0x2   :  { %11 = vsyncpa [#allocation4], 0 }
   0x3   :  { %13 = vsyncpa [#allocation4 + $0x1], 0  ;;  %s1530_s15 = smov 0   ;;  %s1532_s16 = smov 0  }
   0x4   :  { %s1534_s17 = smov 0   ;;  %s1536_s18 = smov 0  }
   0x5 LB: > { %s1551_s19 = sadd.s32 4294967295, %s1493_s18   ;;  %s1076_s20 = sadd.s32 4294967294, %s1493_s18   ;;  %s1493_s18 = sphi %s1536_s18, %s1879_s18   ;;  %s1489_s17 = sphi %s1534_s17, %s1878_s17   ;;  %s1485_s16 = sphi %s1532_s16, %s1877_s16   ;;  %s1481_s15 = sphi %s1530_s15, %s1876_s15  }
   0x6   : > { %s1555_s21 = sadd.s32 1, %s1493_s18   ;;  %s115_s22 = sadd.s32 1, %s1489_s17 }
   0x7   : > { %s112_s23 = ssub.s32 %s1493_s18, %s1555_s21  ;;  %p125_p0 = scmp.ne.s32.totalorder %s1489_s17, %s1485_s16 }
   0x8   : > { %p113_p1 = scmp.eq.s32.totalorder %s112_s23, 0  ;;  %p126_p2 = scmp.eq.s32.totalorder %s1551_s19, 1 }
   0x9   : > { %p131_p3 = scmp.ne.s32.totalorder %s1485_s16, %s1481_s15  ;;  %p132_p4 = scmp.eq.s32.totalorder %s1076_s20, 1 }
   0xa   : > { %s1566_s24 = scalar_select %p113_p1, %s1489_s17, %s115_s22  }
   0xb   : > { %p1568_p5 = por %p126_p2, %p125_p0  ;;  %p1572_p6 = por %p132_p4, %p131_p3 }
   0xc   : > { %p1077_p7 = scmp.ge.s32.totalorder %s1493_s18, 1  ;;  %p139_p8 = scmp.lt.s32.totalorder %s1493_s18, 3 }
   0xd   : > { %s1865_s25 = scalar_select %p1568_p5, 1, 0 }
   0xe   : > { %s1866_s26 = scalar_select %p1572_p6, 1, 0 }
   0xf   : > { %p1862_p9 = scmp.eq.s32.totalorder %s1551_s19, 0  ;;  %p1579_p10 = pnand %p1077_p7, %p139_p8 }
  0x10   : > { %s152_s30 = sshll.u32 %s1857_s0, 4  ;;  %s163_s7 = sshll.u32 %s1858_s1, 4  ;;  %s153_s30 = int_to_ptr.vmem [resolvable:$true] %s152_s30  ;;  %s164_s7 = int_to_ptr.vmem [resolvable:$true] %s163_s7 }
  0x11   : > { %s1867_s27 = scalar_select %p1579_p10, 1, 0 }
  0x12   : > { %p1338_p11 = pneg %p1579_p10  ;;  %s1395_s9 = scalar_lea.vmem %s153_s30, 16 }
  0x13   : > { %p1396_p13 = scmp.ne.s32.totalorder %s153_s30, %s1395_s9  ;;  %p1403_p3 = scmp.lt.s32.totalorder %s153_s30, %s153_s30 }
  0x14   : > { %p1593_p12 = pnand %p1862_p9, %p1338_p11  ;;  %p1404_p4 = scmp.lt.s32.totalorder %s1395_s9, %s1395_s9 }
  0x16   : > { %p1397_p0 = pneg %p1593_p12  ;;  %p1405_p7 = por %p1404_p4, %p1403_p3 }
  0x18   : > { %p1398_p1 = pnand %p1397_p0, %p1396_p13 }
  0x1a   : > { %p1399_p2 = pneg %p1398_p1 }
  0x1c   : > { %p1406_p8 = pnand %p1405_p7, %p1399_p2 }
  0x1e   : > { %1409 = shalt.err (!%p1406_p8)
}
  0x1f   : > { %s1495_s10 = smov [#allocation3]   ;;  %s1410_s11 = scalar_lea.vmem %s164_s7, 16 }
  0x20   : > { %1341 = dma.vmem_to_smem (!%p1593_p12), %s153_s30, 16, %s1495_s10, [#allocation5]  }
  0x21   : > { %p1411_p11 = scmp.ne.s32.totalorder %s164_s7, %s1410_s11  ;;  %p1418_p5 = scmp.lt.s32.totalorder %s164_s7, %s164_s7 }
  0x22   : > { %p1419_p10 = scmp.lt.s32.totalorder %s1410_s11, %s1410_s11 }
  0x23   : > { %p1413_p9 = pnand %p1411_p11, %p1397_p0 }
  0x24   : > { %p1420_p13 = por %p1419_p10, %p1418_p5 }
  0x25   : > { %p1414_p6 = pneg %p1413_p9 }
  0x27   : > { %p1421_p1 = pnand %p1420_p13, %p1414_p6 }
  0x29   : > { %1424 = shalt.err (!%p1421_p1)
}
  0x2a   : > { %s1496_s12 = smov [#allocation6]   ;;  %p1869_p2 = scmp.ne.s32.totalorder %s1867_s27, 0 }
  0x2b   : > { %1344 = dma.vmem_to_smem (!%p1593_p12), %s164_s7, 16, %s1496_s12, [#allocation7]  }
  0x2c   : > { %187 = sbr.rel (%p1869_p2) target bundleno = 620 (0x26c), region = 36  ;;  %p1870_p3 = scmp.eq.s32.totalorder (!%p1869_p2), %s1551_s19, 0 }
  0x31   : > { %1468 = dma.done.wait (%p1870_p3), [#allocation5], 16   ;;  %p1871_p4 = pmov %p1870_p3 }
  0x32   : > { %p1872_p9 = pmov %p1870_p3 }
  0x33   : > { %1470 = vsyncadd (%p1871_p4), [#allocation5], 4294967280 }
  0x34   : > { %1472 = dma.done.wait (%p1872_p9), [#allocation7], 16   ;;  %p1873_p5 = pmov %p1870_p3 }
  0x36   : > { %1474 = vsyncadd (%p1873_p5), [#allocation7], 4294967280 }
  0x37   : > { %197 = sfence }
  0x38   : > { %p218_p6 = scmp.lt.s32.totalorder %s1551_s19, 1  ;;  %v1497_v0 = vmov 0.0   ;;  %vm247_vm0 = vcmask 130048   ;;  %s229_s27 = sld [smem:[#allocation3 + %s1551_s19]]  ;;  %v316_v48 = vld [vmem:[%s1859_s2] sm:$0xff]  ;;  %vm341_vm8 = vcmask 392192  }
  0x39   : > { %223 = vst [vmem:[#allocation2] sm:$0xff] %v1497_v0  ;;  %224 = vst [vmem:[#allocation2 + $0x8] sm:$0xff] %v1497_v0  ;;  %s230_s28 = sld [smem:[#allocation6 + %s1551_s19]]  ;;  %s1498_s29 = smov 2   ;;  %1241 = vmatprep.mubr.msk.f32.mxu1 %vm341_vm8, %v316_v48  ;;  %v1087_v51 = vld [vmem:[%s1859_s2 + $0x30] sm:$0xff]  ;;  %v317_v63 = vld [vmem:[%s1859_s2 + $0x8] sm:$0xff] }
  0x3a   : > { %225 = vst [vmem:[#allocation2 + $0x10] sm:$0xff] %v1497_v0  ;;  %226 = vst [vmem:[#allocation2 + $0x18] sm:$0xff] %v1497_v0  ;;  %s219_s13 = scalar_select %p218_p6, %s1551_s19, 1  ;;  %1220 = vmatprep.mubr.msk.f32.mxu0 %vm341_vm8, %v1087_v51 }
  0x3b   : > { %227 = vst [vmem:[#allocation2 + $0x20] sm:$0xff] %v1497_v0  ;;  %228 = vst [vmem:[#allocation2 + $0x28] sm:$0xff] %v1497_v0  ;;  %s1499_s30 = smov 1   ;;  %s1500_s5 = smov 127  }
  0x3c   : > { %s1326_s14 = smul.u32 48, %s219_s13  ;;  %s1501_s10 = smov 126  }
  0x3d   : > { %s215_s22 = sand.u32 1, %s1485_s16   ;;  %p1874_p12 = scmp.ne.s32.totalorder %s1865_s25, 0 }
  0x3e   : > { %s222_s23 = scalar_lea.vmem %s1860_s3, %s1326_s14  ;;  %v272_v21 = vstv %s229_s27  ;;  %s1327_s27 = smul.u32 768, %s1551_s19 }
  0x3f   : > { %v232_v1 = vld [vmem:[%s222_s23 + $0x8] sm:$0xff]  ;;  %v234_v2 = vld [vmem:[%s222_s23 + $0x18] sm:$0xff]  ;;  %v231_v5 = vld [vmem:[%s222_s23] sm:$0xff]  ;;  %v275_v26 = vstv %s230_s28  ;;  %s1817_s6 = scalar_lea.sflag [#allocation4], %s215_s22  ;;  %s1502_s8 = smov [#allocation8]  }
  0x40   : > { %v236_v3 = vld [vmem:[%s222_s23 + $0x28] sm:$0xff]  ;;  %v238_v4 = vadd.f32 %v234_v2, %v232_v1  ;;  %v233_v6 = vld [vmem:[%s222_s23 + $0x10] sm:$0xff]  ;;  %v235_v7 = vld [vmem:[%s222_s23 + $0x20] sm:$0xff]  ;;  %v274_v22 = vmul.f32 %v272_v21, %v232_v1  ;;  %v283_v23 = vmul.f32 %v272_v21, %v234_v2  ;;  %v273_v27 = vmul.f32 %v272_v21, %v231_v5  ;;  %s1325_s23 = smul.u32 48, %s215_s22  ;;  %s1429_s9 = sshll.u32 %s1502_s8, 4  ;;  %s1430_s9 = int_to_ptr.vmem [resolvable:$false] %s1429_s9 }
  0x41   : > { %v237_v8 = vadd.f32 %v233_v6, %v231_v5  ;;  %v291_v24 = vmul.f32 %v272_v21, %v236_v3  ;;  %v282_v28 = vmul.f32 %v272_v21, %v233_v6  ;;  %v290_v29 = vmul.f32 %v272_v21, %v235_v7  ;;  %v1088_v6 = vld [vmem:[%s1859_s2 + $0x38] sm:$0xff]  ;;  %v1119_v21 = vld [vmem:[%s1859_s2 + $0xa0] sm:$0xff] }
  0x42   : > { %v240_v9 = vadd.f32 %v238_v4, %v236_v3  ;;  %v277_v30 = vadd.f32 %v275_v26, %v274_v22  ;;  %v285_v31 = vadd.f32 %v283_v23, %v275_v26  ;;  %v276_v34 = vadd.f32 %v275_v26, %v273_v27  ;;  %v319_v3 = vld [vmem:[%s1859_s2 + $0x18] sm:$0xff]  ;;  %v320_v4 = vld [vmem:[%s1859_s2 + $0x20] sm:$0xff]  ;;  %v1121_v27 = vld [vmem:[%s1859_s2 + $0xb0] sm:$0xff]  ;;  %s217_s28 = scalar_lea.vmem [#allocation8], %s1325_s23 }
  0x43   : > { %v239_v10 = vadd.f32 %v237_v8, %v235_v7  ;;  %v293_v32 = vadd.f32 %v291_v24, %v275_v26  ;;  %v284_v35 = vadd.f32 %v282_v28, %v275_v26  ;;  %v292_v39 = vadd.f32 %v290_v29, %v275_v26  ;;  %v1089_v7 = vld [vmem:[%s1859_s2 + $0x40] sm:$0xff]  ;;  %v1120_v24 = vld [vmem:[%s1859_s2 + $0xa8] sm:$0xff]  ;;  %v1108_v26 = vld [vmem:[%s1859_s2 + $0x78] sm:$0xff] }
  0x44   : > { %vm242_vm1 = vcmp.ne.f32.partialorder %v240_v9, 0.0  ;;  %v1090_v9 = vld [vmem:[%s1859_s2 + $0x48] sm:$0xff] }
  0x45   : > { %v1086_v11 = vsel %vm242_vm1, 1.0, %v1497_v0  ;;  %vm241_vm2 = vcmp.ne.f32.partialorder %v239_v10, 0.0  ;;  %v321_v10 = vld [vmem:[%s1859_s2 + $0x28] sm:$0xff] }
  0x46   : > { %v251_v12 = vsel %vm247_vm0, %v1086_v11, -inf  ;;  %v1085_v13 = vsel %vm241_vm2, 1.0, %v1497_v0  ;;  %v318_v0 = vld [vmem:[%s1859_s2 + $0x10] sm:$0xff] }
  0x47   : > { %252 = vmax.xlane.f32.xlu0 %v251_v12  ;;  %v248_v14 = vsel %vm247_vm0, %v1085_v13, -inf  ;;  %v1091_v13 = vld [vmem:[%s1859_s2 + $0x50] sm:$0xff] }
  0x48   : > { %v256_v15 = vmax.f32 %v248_v14, %v251_v12 }
  0x4a   : > { %v257_v16 = vrot.slane %v256_v15, 4 }
  0x4b   : > { %249 = vmax.xlane.f32.xlu0 %v248_v14  ;;  %v1092_v14 = vld [vmem:[%s1859_s2 + $0x58] sm:$0xff] }
  0x4c   : > { %v258_v17 = vmax.f32 %v256_v15, %v257_v16  ;;  %v1117_v16 = vld [vmem:[%s1859_s2 + $0x90] sm:$0xff] }
  0x4e   : > { %v259_v18 = vrot.slane %v258_v17, 2 }
  0x50   : > { %v260_v19 = vmax.f32 %v258_v17, %v259_v18  ;;  %v1118_v18 = vld [vmem:[%s1859_s2 + $0x98] sm:$0xff] }
  0x52   : > { %v261_v20 = vrot.slane %v260_v19, 1 }
  0x54   : > { %v262_v25 = vmax.f32 %v260_v19, %v261_v20  ;;  %v1105_v19 = vld [vmem:[%s1859_s2 + $0x60] sm:$0xff]  ;;  %v1106_v20 = vld [vmem:[%s1859_s2 + $0x68] sm:$0xff] }
  0x56   : > { %vm263_vm3 = vcmp.gt.f32.partialorder %v262_v25, 0.5  ;;  %v1107_v25 = vld [vmem:[%s1859_s2 + $0x70] sm:$0xff] }
  0xd0   : > { %v253_v33 = vpop.xlane.xlu0 %252 }
  0xd1   : > { %vm255_vm4 = vcmp.gt.f32.partialorder %v253_v33, 0.5 }
  0xd2   : > { %vm271_vm5 = vmand %vm255_vm4, %vm263_vm3 }
  0xd3   : > { %v279_v36 = vsel %vm271_vm5, %v277_v30, 0.0  ;;  %v287_v37 = vsel %vm271_vm5, %v285_v31, 0.0  ;;  %v295_v38 = vsel %vm271_vm5, %v293_v32, 0.0  ;;  %v1122_v30 = vld [vmem:[%s1859_s2 + $0xb8] sm:$0xff]  ;;  %v1109_v31 = vld [vmem:[%s1859_s2 + $0x80] sm:$0xff]  ;;  %v1110_v32 = vld [vmem:[%s1859_s2 + $0x88] sm:$0xff] }
  0xd4   : > { %281 = vst.msk [vmem:[#allocation2 + $0x8] sm:$0xff] %vm247_vm0, %v279_v36  ;;  %289 = vst.msk [vmem:[#allocation2 + $0x18] sm:$0xff] %vm247_vm0, %v287_v37  ;;  %v250_v40 = vpop.xlane.xlu0 %249  ;;  %v1129_v36 = vld [vmem:[%s1859_s2 + $0xc0] sm:$0xff] }
  0xd5   : > { %297 = vst.msk [vmem:[#allocation2 + $0x28] sm:$0xff] %vm247_vm0, %v295_v38  ;;  %vm254_vm6 = vcmp.gt.f32.partialorder %v250_v40, 0.5  ;;  %v1133_v37 = vld [vmem:[%s1859_s2 + $0xe0] sm:$0xff]  ;;  %v1130_v38 = vld [vmem:[%s1859_s2 + $0xc8] sm:$0xff] }
  0xd6   : > { %vm270_vm7 = vmand %vm254_vm6, %vm263_vm3 }
  0xd7   : > { %v278_v41 = vsel %vm270_vm7, %v276_v34, 0.0  ;;  %v286_v42 = vsel %vm270_vm7, %v284_v35, 0.0  ;;  %v294_v43 = vsel %vm270_vm7, %v292_v39, 0.0  ;;  %v1131_v34 = vld [vmem:[%s1859_s2 + $0xd0] sm:$0xff]  ;;  %v1132_v35 = vld [vmem:[%s1859_s2 + $0xd8] sm:$0xff]  ;;  %v1134_v39 = vld [vmem:[%s1859_s2 + $0xe8] sm:$0xff] }
  0xd8   : > { %280 = vst.msk [vmem:[#allocation2] sm:$0xff] %vm247_vm0, %v278_v41  ;;  %288 = vst.msk [vmem:[#allocation2 + $0x10] sm:$0xff] %vm247_vm0, %v286_v42 }
  0xd9   : > { %296 = vst.msk [vmem:[#allocation2 + $0x20] sm:$0xff] %vm247_vm0, %v294_v43 }
  0xdb   : > { %v1632_v45 = vld [vmem:[#allocation2 + $0x18] sm:$0xff]  ;;  %v1652_v49 = vld [vmem:[#allocation2 + $0x8] sm:$0xff] }
  0xdc   : > { %v1630_v44 = vld [vmem:[#allocation2 + $0x28] sm:$0xff]  ;;  %310 = vrot.lane.b32.xlu0 %v1632_v45, %s1498_s29 }
  0xdd   : > { %314 = vrot.lane.b32.xlu1 %v1630_v44, %s1498_s29 }
  0xdf   : > { %v1638_v47 = vld [vmem:[#allocation2 + $0x10] sm:$0xff]  ;;  %v1654_v50 = vld [vmem:[#allocation2] sm:$0xff] }
  0xe0   : > { %v1636_v46 = vld [vmem:[#allocation2 + $0x20] sm:$0xff]  ;;  %326 = vrot.lane.b32.xlu0 %v1638_v47, %s1499_s30 }
  0xe1   : > { %312 = vrot.lane.b32.xlu1 %v1636_v46, %s1498_s29 }
  0xe4   : > { %704 = vrot.lane.b32.xlu0 %v1630_v44, %s1500_s5 }
  0xe5   : > { %332 = vrot.lane.b32.xlu1 %v1630_v44, %s1499_s30 }
  0xe8   : > { %702 = vrot.lane.b32.xlu0 %v1636_v46, %s1500_s5 }
  0xe9   : > { %308 = vrot.lane.b32.xlu1 %v1638_v47, %s1498_s29 }
  0xec   : > { %698 = vrot.lane.b32.xlu0 %v1638_v47, %s1500_s5 }
  0xed   : > { %330 = vrot.lane.b32.xlu1 %v1636_v46, %s1499_s30 }
  0xf0   : > { %694 = vrot.lane.b32.xlu0 %v1654_v50, %s1500_s5 }
  0xf1   : > { %306 = vrot.lane.b32.xlu1 %v1652_v49, %s1498_s29 }
  0xf4   : > { %840 = vrot.lane.b32.xlu0 %v1636_v46, %s1501_s10 }
  0xf5   : > { %328 = vrot.lane.b32.xlu1 %v1632_v45, %s1499_s30 }
  0xf8   : > { %836 = vrot.lane.b32.xlu0 %v1638_v47, %s1501_s10 }
  0xf9   : > { %304 = vrot.lane.b32.xlu1 %v1654_v50, %s1498_s29  ;;  %s992_s29 = sshll.u32 %s217_s28, 4  ;;  %s1810_s29 = int_to_ptr.vmem [resolvable:$true] %s992_s29 }
  0xfa   : > { %s1425_s7 = scalar_lea.vmem %s1810_s29, 768  ;;  %p1432_p8 = scmp.lt.s32.totalorder %s1810_s29, %s1430_s9 }
  0xfb   : > { %p1426_p10 = scmp.ne.s32.totalorder %s1810_s29, %s1425_s7 }
  0xfc   : > { %832 = vrot.lane.b32.xlu0 %v1654_v50, %s1501_s10 }
  0xfd   : > { %324 = vrot.lane.b32.xlu1 %v1652_v49, %s1499_s30  ;;  %p1427_p0 = pnand %p1426_p10, %p1874_p12 }
  0xff   : > { %p1428_p7 = pneg %p1427_p0 }
 0x101   : > { %322 = vrot.lane.b32.xlu1 %v1654_v50, %s1499_s30 }
 0x105   : > { %700 = vrot.lane.b32.xlu1 %v1632_v45, %s1500_s5 }
 0x109   : > { %696 = vrot.lane.b32.xlu1 %v1652_v49, %s1500_s5  ;;  %s1808_s5 = scalar_lea.hbm %s1861_s4, %s1327_s27 }
 0x10d   : > { %842 = vrot.lane.b32.xlu1 %v1630_v44, %s1501_s10 }
 0x111   : > { %838 = vrot.lane.b32.xlu1 %v1632_v45, %s1501_s10 }
 0x115   : > { %834 = vrot.lane.b32.xlu1 %v1652_v49, %s1501_s10  ;;  %s1431_s10 = scalar_lea.vmem %s1430_s9, 1536 }
 0x116   : > { %p1433_p11 = scmp.lt.s32.totalorder %s1431_s10, %s1425_s7 }
 0x118   : > { %p1434_p13 = por %p1433_p11, %p1432_p8 }
 0x11a   : > { %p1435_p1 = pnand %p1434_p13, %p1428_p7 }
 0x14e   : > { %v311_v54 = vpop.permute.xlu0 %310 }
 0x14f   : > { %v315_v52 = vpop.permute.xlu1 %314 }
 0x150   : > { %1229 = vmatprep.subr.mxu1 %v315_v52 }
 0x151   : > { %1230 = vmatpush3.msra.mxu1 %v315_v52 }
 0x152   : > { %v327_v58 = vpop.permute.xlu0 %326 }
 0x153   : > { %v313_v53 = vpop.permute.xlu1 %312 }
 0x154   : > { %1231 = vmatprep.subr.mxu1 %v313_v53 }
 0x155   : > { %1232 = vmatpush3.msra.mxu1 %v313_v53 }
 0x156   : > { %1233 = vmatprep.subr.mxu1 %v311_v54  ;;  %v705_v61 = vpop.permute.xlu0 %704 }
 0x157   : > { %1234 = vmatpush3.msra.mxu1 %v311_v54  ;;  %v333_v55 = vpop.permute.xlu1 %332 }
 0x158   : > { %1208 = vmatprep.subr.mxu0 %v333_v55 }
 0x159   : > { %1209 = vmatpush3.msra.mxu0 %v333_v55 }
 0x15a   : > { %v703_v1 = vpop.permute.xlu0 %702 }
 0x15b   : > { %v309_v56 = vpop.permute.xlu1 %308 }
 0x15c   : > { %1235 = vmatprep.subr.mxu1 %v309_v56 }
 0x15d   : > { %1236 = vmatpush3.msra.mxu1 %v309_v56 }
 0x15e   : > { %v699_v11 = vpop.permute.xlu0 %698 }
 0x15f   : > { %v331_v57 = vpop.permute.xlu1 %330 }
 0x160   : > { %1210 = vmatprep.subr.mxu0 %v331_v57 }
 0x161   : > { %1211 = vmatpush3.msra.mxu0 %v331_v57 }
 0x162   : > { %v695_v15 = vpop.permute.xlu0 %694 }
 0x163   : > { %v307_v59 = vpop.permute.xlu1 %306 }
 0x164   : > { %1237 = vmatprep.subr.mxu1 %v307_v59 }
 0x165   : > { %1238 = vmatpush3.msra.mxu1 %v307_v59 }
 0x166   : > { %v841_v22 = vpop.permute.xlu0 %840 }
 0x167   : > { %v329_v60 = vpop.permute.xlu1 %328 }
 0x168   : > { %1212 = vmatprep.subr.mxu0 %v329_v60 }
 0x169   : > { %1213 = vmatpush3.msra.mxu0 %v329_v60 }
 0x16a   : > { %1214 = vmatprep.subr.mxu0 %v327_v58  ;;  %v837_v28 = vpop.permute.xlu0 %836 }
 0x16b   : > { %1215 = vmatpush3.msra.mxu0 %v327_v58  ;;  %v305_v62 = vpop.permute.xlu1 %304 }
 0x16c   : > { %1239 = vmatprep.subr.mxu1 %v305_v62 }
 0x16d   : > { %1240 = vmatpush3.msra.mxu1 %v305_v62 }
 0x16e   : > { %1271 = vmatprep.subr.mxu1 %v705_v61  ;;  %1242 = vmatmul.mubr.msk.f32.vlgmr.msra.gmra.mxu1 %vm341_vm8, %v317_v63  ;;  %v833_v33 = vpop.permute.xlu0 %832 }
 0x16f   : > { %1272 = vmatpush3.msra.mxu1 %v705_v61  ;;  %v325_v2 = vpop.permute.xlu1 %324  ;;  %1244 = vmatprep.mubr.msk.f32.mxu1 %vm341_vm8, %v318_v0 }
 0x170   : > { %1216 = vmatprep.subr.mxu0 %v325_v2  ;;  %1273 = vmatprep.subr.mxu1 %v703_v1 }
 0x171   : > { %1217 = vmatpush3.msra.mxu0 %v325_v2  ;;  %1274 = vmatpush3.msra.mxu1 %v703_v1 }
 0x172   : > { %1245 = vmatmul.mubr.msk.f32.gmra.mxu1 %vm341_vm8, %v319_v3 }
 0x173   : > { %v323_v5 = vpop.permute.xlu1 %322  ;;  %1247 = vmatprep.mubr.msk.f32.mxu1 %vm341_vm8, %v320_v4 }
 0x174   : > { %1218 = vmatprep.subr.mxu0 %v323_v5 }
 0x175   : > { %1219 = vmatpush3.msra.mxu0 %v323_v5 }
 0x176   : > { %1221 = vmatmul.mubr.msk.f32.vlgmr.msra.gmra.mxu0 %vm341_vm8, %v1088_v6  ;;  %1250 = vmatprep.subr.mxu0 %v1630_v44 }
 0x177   : > { %1251 = vmatpush3.msra.mxu0 %v1630_v44  ;;  %v701_v8 = vpop.permute.xlu1 %700  ;;  %1223 = vmatprep.mubr.msk.f32.mxu0 %vm341_vm8, %v1089_v7 }
 0x178   : > { %1252 = vmatprep.subr.mxu0 %v1636_v46  ;;  %1275 = vmatprep.subr.mxu1 %v701_v8 }
 0x179   : > { %1253 = vmatpush3.msra.mxu0 %v1636_v46  ;;  %1276 = vmatpush3.msra.mxu1 %v701_v8 }
 0x17a   : > { %1224 = vmatmul.mubr.msk.f32.gmra.mxu0 %vm341_vm8, %v1090_v9  ;;  %1254 = vmatprep.subr.mxu0 %v1632_v45 }
 0x17b   : > { %1277 = vmatprep.subr.mxu1 %v699_v11  ;;  %1248 = vmatmul.mubr.msk.f32.gmra.mxu1 %vm341_vm8, %v321_v10  ;;  %v697_v12 = vpop.permute.xlu1 %696 }
 0x17c   : > { %1255 = vmatpush3.msra.mxu0 %v1632_v45  ;;  %1278 = vmatpush3.msra.mxu1 %v699_v11 }
 0x17d   : > { %1256 = vmatprep.subr.mxu0 %v1638_v47  ;;  %1279 = vmatprep.subr.mxu1 %v697_v12 }
 0x17e   : > { %1226 = vmatprep.mubr.msk.f32.mxu0 %vm341_vm8, %v1091_v13  ;;  %1257 = vmatpush3.msra.mxu0 %v1638_v47 }
 0x17f   : > { %1280 = vmatpush3.msra.mxu1 %v697_v12  ;;  %1227 = vmatmul.mubr.msk.f32.gmra.mxu0 %vm341_vm8, %v1092_v14  ;;  %v843_v17 = vpop.permute.xlu1 %842 }
 0x180   : > { %1258 = vmatprep.subr.mxu0 %v1652_v49  ;;  %1281 = vmatprep.subr.mxu1 %v695_v15 }
 0x181   : > { %1259 = vmatpush3.msra.mxu0 %v1652_v49  ;;  %1282 = vmatpush3.msra.mxu1 %v695_v15 }
 0x182   : > { %1283 = vmatprep.mubr.msk.f32.mxu1 %vm341_vm8, %v1117_v16  ;;  %1260 = vmatprep.subr.mxu0 %v1654_v50 }
 0x183   : > { %1284 = vmatmul.mubr.msk.f32.vlgmr.msra.gmra.mxu1 %vm341_vm8, %v1118_v18  ;;  %1313 = vmatprep.subr.mxu1 %v843_v17  ;;  %v839_v23 = vpop.permute.xlu1 %838 }
 0x184   : > { %1261 = vmatpush3.msra.mxu0 %v1654_v50  ;;  %1262 = vmatprep.mubr.msk.f32.mxu0 %vm341_vm8, %v1105_v19 }
 0x185   : > { %1319 = vmatpush3.msra.mxu1 %v843_v17  ;;  %1263 = vmatmul.mubr.msk.f32.vlgmr.msra.gmra.mxu0 %vm341_vm8, %v1106_v20 }
 0x186   : > { %1292 = vmatprep.subr.mxu0 %v843_v17  ;;  %1314 = vmatprep.subr.mxu1 %v841_v22 }
 0x187   : > { %1286 = vmatprep.mubr.msk.f32.mxu1 %vm341_vm8, %v1119_v21  ;;  %1293 = vmatpush3.msra.mxu0 %v843_v17  ;;  %v835_v29 = vpop.permute.xlu1 %834 }
 0x188   : > { %1320 = vmatpush3.msra.mxu1 %v841_v22  ;;  %1294 = vmatprep.subr.mxu0 %v841_v22 }
 0x189   : > { %1287 = vmatmul.mubr.msk.f32.gmra.mxu1 %vm341_vm8, %v1120_v24  ;;  %1315 = vmatprep.subr.mxu1 %v839_v23 }
 0x18a   : > { %1265 = vmatprep.mubr.msk.f32.mxu0 %vm341_vm8, %v1107_v25  ;;  %1295 = vmatpush3.msra.mxu0 %v841_v22 }
 0x18b   : > { %1321 = vmatpush3.msra.mxu1 %v839_v23  ;;  %1266 = vmatmul.mubr.msk.f32.gmra.mxu0 %vm341_vm8, %v1108_v26 }
 0x18c   : > { %1296 = vmatprep.subr.mxu0 %v839_v23  ;;  %1316 = vmatprep.subr.mxu1 %v837_v28 }
 0x18d   : > { %1289 = vmatprep.mubr.msk.f32.mxu1 %vm341_vm8, %v1121_v27  ;;  %1297 = vmatpush3.msra.mxu0 %v839_v23 }
 0x18e   : > { %1322 = vmatpush3.msra.mxu1 %v837_v28  ;;  %1298 = vmatprep.subr.mxu0 %v837_v28 }
 0x18f   : > { %1290 = vmatmul.mubr.msk.f32.gmra.mxu1 %vm341_vm8, %v1122_v30  ;;  %1317 = vmatprep.subr.mxu1 %v835_v29 }
 0x190   : > { %1268 = vmatprep.mubr.msk.f32.mxu0 %vm341_vm8, %v1109_v31  ;;  %1299 = vmatpush3.msra.mxu0 %v837_v28 }
 0x191   : > { %1323 = vmatpush3.msra.mxu1 %v835_v29  ;;  %1269 = vmatmul.mubr.msk.f32.gmra.mxu0 %vm341_vm8, %v1110_v32 }
 0x192   : > { %1300 = vmatprep.subr.mxu0 %v835_v29  ;;  %1318 = vmatprep.subr.mxu1 %v833_v33 }
 0x193   : > { %1301 = vmatpush3.msra.mxu0 %v835_v29  ;;  %1324 = vmatpush3.msra.mxu1 %v833_v33 }
 0x194   : > { %1307 = vmatprep.mubr.msk.f32.mxu1 %vm341_vm8, %v1131_v34  ;;  %1302 = vmatprep.subr.mxu0 %v833_v33 }
 0x195   : > { %1308 = vmatmul.mubr.msk.f32.vlgmr.msra.gmra.mxu1 %vm341_vm8, %v1132_v35  ;;  %1303 = vmatpush3.msra.mxu0 %v833_v33 }
 0x196   : > { %1304 = vmatprep.mubr.msk.f32.mxu0 %vm341_vm8, %v1129_v36  ;;  %1310 = vmatprep.mubr.msk.f32.mxu1 %vm341_vm8, %v1133_v37 }
 0x197   : > { %1305 = vmatmul.mubr.msk.f32.vlgmr.msra.gmra.mxu0 %vm341_vm8, %v1130_v38 }
 0x199   : > { %1311 = vmatmul.mubr.msk.f32.gmra.mxu1 %vm341_vm8, %v1134_v39 }
 0x22e   : > { %v1243_v40 = vpop.f32.mrf.mxu1 }
 0x230   : > { %v539_v41 = vpop.f32.mrf.mxu1 }
 0x232   : > { %v1246_v42 = vpop.f32.mrf.mxu1 }
 0x234   : > { %v549_v45 = vpop.f32.mrf.mxu1 }
 0x236   : > { %v1222_v43 = vpop.f32.mrf.mxu0 }
 0x237   : > { %v545_v62 = vadd.f32 %v1243_v40, %v1222_v43 }
 0x238   : > { %v426_v44 = vpop.f32.mrf.mxu0 }
 0x239   : > { %v540_v3 = vadd.f32 %v539_v41, %v426_v44 }
 0x23a   : > { %v1225_v46 = vpop.f32.mrf.mxu0 }
 0x23b   : > { %v1249_v48 = vpop.f32.mrf.mxu1  ;;  %v555_v60 = vadd.f32 %v1246_v42, %v1225_v46 }
 0x23c   : > { %v436_v47 = vpop.f32.mrf.mxu0 }
 0x23d   : > { %v559_v50 = vpop.f32.mrf.mxu1  ;;  %v550_v63 = vadd.f32 %v549_v45, %v436_v47 }
 0x23f   : > { %v1228_v49 = vpop.f32.mrf.mxu0 }
 0x240   : > { %v565_v4 = vadd.f32 %v1249_v48, %v1228_v49 }
 0x241   : > { %v446_v51 = vpop.f32.mrf.mxu0 }
 0x242   : > { %v560_v8 = vadd.f32 %v559_v50, %v446_v51 }
 0x243   : > { %v1285_v52 = vpop.f32.mrf.mxu1 }
 0x245   : > { %v1264_v53 = vpop.f32.mrf.mxu0  ;;  %v797_v54 = vpop.f32.mrf.mxu1 }
 0x246   : > { %v689_v5 = vadd.f32 %v1264_v53, %v545_v62 }
 0x247   : > { %v659_v55 = vpop.f32.mrf.mxu0 }
 0x248   : > { %v688_v9 = vadd.f32 %v659_v55, %v540_v3  ;;  %v827_v15 = vadd.f32 %v1285_v52, %v689_v5 }
 0x249   : > { %v1288_v56 = vpop.f32.mrf.mxu1 }
 0x24a   : > { %v826_v21 = vadd.f32 %v797_v54, %v688_v9 }
 0x24b   : > { %v1267_v57 = vpop.f32.mrf.mxu0  ;;  %v807_v58 = vpop.f32.mrf.mxu1 }
 0x24c   : > { %v691_v0 = vadd.f32 %v1267_v57, %v555_v60 }
 0x24d   : > { %v669_v59 = vpop.f32.mrf.mxu0 }
 0x24e   : > { %v690_v6 = vadd.f32 %v669_v59, %v550_v63  ;;  %v829_v11 = vadd.f32 %v1288_v56, %v691_v0 }
 0x24f   : > { %v1291_v61 = vpop.f32.mrf.mxu1 }
 0x250   : > { %v828_v16 = vadd.f32 %v807_v58, %v690_v6 }
 0x251   : > { %v1270_v1 = vpop.f32.mrf.mxu0  ;;  %v817_v2 = vpop.f32.mrf.mxu1 }
 0x252   : > { %v693_v10 = vadd.f32 %v1270_v1, %v565_v4 }
 0x253   : > { %v679_v7 = vpop.f32.mrf.mxu0 }
 0x254   : > { %v692_v13 = vadd.f32 %v679_v7, %v560_v8  ;;  %v831_v22 = vadd.f32 %v1291_v61, %v693_v10 }
 0x255   : > { %v1309_v12 = vpop.f32.mrf.mxu1 }
 0x256   : > { %v967_v14 = vadd.f32 %v1309_v12, %v829_v11  ;;  %v830_v27 = vadd.f32 %v817_v2, %v692_v13 }
 0x257   : > { %v1306_v17 = vpop.f32.mrf.mxu0  ;;  %v945_v18 = vpop.f32.mrf.mxu1 }
 0x258   : > { %1142 = vst.msk [vmem:[%s217_s28 + $0x18] sm:$0xff] %vm247_vm0, %v967_v14  ;;  %v965_v19 = vadd.f32 %v1306_v17, %v827_v15  ;;  %v966_v20 = vadd.f32 %v945_v18, %v828_v16 }
 0x259   : > { %v935_v23 = vpop.f32.mrf.mxu0  ;;  %v1312_v24 = vpop.f32.mrf.mxu1 }
 0x25a   : > { %971 = vst.msk [vmem:[%s217_s28 + $0x8] sm:$0xff] %vm247_vm0, %v965_v19  ;;  %1141 = vst.msk [vmem:[%s217_s28 + $0x10] sm:$0xff] %vm247_vm0, %v966_v20  ;;  %v964_v25 = vadd.f32 %v935_v23, %v826_v21  ;;  %v969_v26 = vadd.f32 %v1312_v24, %v831_v22 }
 0x25b   : > { %v955_v28 = vpop.f32.mrf.mxu1 }
 0x25c   : > { %970 = vst.msk [vmem:[%s217_s28] sm:$0xff] %vm247_vm0, %v964_v25  ;;  %1144 = vst.msk [vmem:[%s217_s28 + $0x28] sm:$0xff] %vm247_vm0, %v969_v26  ;;  %v968_v29 = vadd.f32 %v955_v28, %v830_v27 }
 0x25e   : > { %1143 = vst.msk [vmem:[%s217_s28 + $0x20] sm:$0xff] %vm247_vm0, %v968_v29 }
 0x25f   : > { %1438 = shalt.err (!%p1435_p1)
}
 0x260   : > { %s1439_s11 = scalar_lea.hbm %s1808_s5, 768  ;;  %s1443_s14 = scalar_lea.hbm %s1861_s4, 1536 }
 0x261   : > { %p1440_p2 = scmp.ne.s32.totalorder %s1808_s5, %s1439_s11  ;;  %p1444_p9 = scmp.lt.s32.totalorder %s1808_s5, %s1861_s4 }
 0x262   : > { %p1445_p5 = scmp.lt.s32.totalorder %s1443_s14, %s1439_s11 }
 0x263   : > { %p1441_p3 = pnand %p1440_p2, %p1874_p12 }
 0x264   : > { %p1446_p6 = por %p1445_p5, %p1444_p9 }
 0x265   : > { %p1442_p4 = pneg %p1441_p3 }
 0x267   : > { %p1447_p10 = pnand %p1446_p6, %p1442_p4 }
 0x269   : > { %1450 = shalt.err (!%p1447_p10)
}
 0x26a   : > { %s1503_s23 = smov 128   ;;  %s1504_s27 = smov 8  }
 0x26b   : > { %1336 = dma.vmem_to_hbm [thread:$0]  (%p1874_p12), %s1810_s29, 768, %s1808_s5, %s1817_s6, %s1503_s23, %s1503_s23, %s1504_s27  }
 0x26c PF: > { %p1353_p0 = scmp.ge.s32.totalorder %s1493_s18, 2  ;;  %s1007_s28 = sand.u32 1, %s1481_s15  }
 0x26d   : > { %p1875_p7 = scmp.ne.s32.totalorder %s1866_s26, 0  ;;  %s1008_s19 = scalar_lea.sflag [#allocation4], %s1007_s28 }
 0x26f   : > { %p1346_p8 = pnand %p1353_p0, %p1875_p7 }
 0x271   : > { %p1347_p11 = pneg %p1346_p8 }
 0x273   : > { %1476 = dma.done.wait (%p1347_p11), %s1008_s19, 768  }
 0x274   : > { %1478 = vsyncadd (%p1347_p11), %s1008_s19, 4294966528  ;;  %p16_p13 = scmp.ge.s32.totalorder %s1555_s21, 4   ;;  %s1876_s15 = smov %s1485_s16 }
 0x275   : > { %s1877_s16 = smov %s1489_s17  ;;  %s1878_s17 = smov %s1566_s24 }
 0x276   : > { %s1879_s18 = smov %s1555_s21  ;;  %18 = sbr.rel (!%p16_p13) target bundleno = 5 (0x5), region = 86 }
 0x27b   :  { %1013 = vsyncpa [#allocation4], 1 }
 0x27c   :  { %1015 = vsyncpa [#allocation4 + $0x1], 1 }
 0x27d   :  { %1016 = vsyncpa [#allocation5], 1 }
 0x27e   :  { %1018 = vsyncpa [#allocation5 + $0x1], 1 }
 0x27f   :  { %1019 = vsyncpa [#allocation7], 1 }

</bundles_post_ra>
